<compile_context>
chip_gen: v7x
topology: tpu7x:2x2x1
jax: 0.10.0
libtpu: 0.0.40
codegen_flags: <defaults>
</compile_context>

<pallas_src>
import functools

import jax
import jax.numpy as jnp
import numpy as np
from jax import lax
from jax.experimental import pallas as pl
from jax.experimental.pallas import tpu as pltpu


# ----------------------- pltpu.roll direction guard ---------------------------
@functools.lru_cache(maxsize=None)
def _roll_sign():
    """Resolve the lane-rotation convention of pltpu.roll on this backend.

    Returns +1 if pltpu.roll(x, s, axis) == jnp.roll(x, s, axis), else -1, so the
    conv-tap shifts below are correct under either convention.
    NOTE: cached process-wide from one hardware probe; do not mix interpret mode
    and hardware in the same process with this cache populated.
    """
    def probe_kernel(x_ref, o_ref):
        o_ref[...] = pltpu.roll(x_ref[...], shift=1, axis=1)

    x = jnp.broadcast_to(jnp.arange(128, dtype=jnp.float32)[None, :], (8, 128))
    y = pl.pallas_call(
        probe_kernel, out_shape=jax.ShapeDtypeStruct((8, 128), jnp.float32))(x)
    y = np.asarray(jax.block_until_ready(y))
    return 1 if np.array_equal(y, np.roll(np.asarray(x), 1, axis=1)) else -1


# ----------------------------- TimeEmbedding ---------------------------------
def _time_embed_kernel(x_ref, w1q_ref, s1_ref, b1_ref, w2q_ref, s2_ref, b2_ref,
                       out_ref):
    # int8 weights dequantized in VMEM (VPU is idle; HBM traffic already halved),
    # bf16 operands on the MXU, f32 accumulation.
    w1 = (w1q_ref[...].astype(jnp.float32) * s1_ref[...]).astype(jnp.bfloat16)
    h = jnp.dot(x_ref[...], w1, preferred_element_type=jnp.float32) + b1_ref[...]
    h = h * jax.nn.sigmoid(h)                                        # SiLU
    w2 = (w2q_ref[...].astype(jnp.float32) * s2_ref[...]).astype(jnp.bfloat16)
    o = jnp.dot(h.astype(jnp.bfloat16), w2,
                preferred_element_type=jnp.float32) + b2_ref[...]
    out_ref[...] = o.astype(out_ref.dtype)


def time_embedding(t, w1q, s1, b1, w2q, s2, b2, *, n_tiles=2):
    B, D = t.shape
    H4 = w1q.shape[1]
    assert H4 % n_tiles == 0
    tn = H4 // n_tiles                                               # 640, lane-dense
    return pl.pallas_call(
        _time_embed_kernel,
        out_shape=jax.ShapeDtypeStruct((B, H4), jnp.float32),
        grid_spec=pltpu.PrefetchScalarGridSpec(
            num_scalar_prefetch=0,
            grid=(n_tiles,),
            in_specs=[
                pl.BlockSpec((B, D), lambda j: (0, 0)),       # timestep (resident)
                pl.BlockSpec((D, H4), lambda j: (0, 0)),      # w1 int8 (resident)
                pl.BlockSpec((1, H4), lambda j: (0, 0)),      # s1
                pl.BlockSpec((1, H4), lambda j: (0, 0)),      # b1
                pl.BlockSpec((H4, tn), lambda j: (0, j)),     # w2 int8 tile (streamed)
                pl.BlockSpec((1, tn), lambda j: (0, j)),      # s2 tile
                pl.BlockSpec((1, tn), lambda j: (0, j)),      # b2 tile
            ],
            out_specs=pl.BlockSpec((B, tn), lambda j: (0, j)),
        ),
        compiler_params=pltpu.CompilerParams(dimension_semantics=("parallel",)),
    )(t.astype(jnp.bfloat16), w1q, s1, b1, w2q, s2, b2)


# ---------------- FinalLayer: fused GroupNorm + SiLU + 3x3 conv ---------------
def _final_layer_kernel(x_ref, member_ref, membert_ref, gamma_ref, beta_ref,
                        w_ref, b_ref, out_ref, *, H, W, eps, cpg, roll_sign):
    # x_ref:       (1, C, HW)   f32 channels-first activation of one image
    # member_ref:  (C, G)       one-hot channel->group membership; membert_ref: (G, C)
    # gamma/beta:  (C, 1)       GroupNorm affine
    # w_ref:       (9, Cout, C) bf16 conv taps (tap-major, (out, in) per tap)
    # b_ref:       (Cout, 1)    conv bias
    # out_ref:     (1, Cout, HW) lane-dense conv output
    x = x_ref[0]                                                     # (C, HW) f32
    HW = x.shape[1]
    Cout = w_ref.shape[1]

    # --- GroupNorm statistics on the MXU (otherwise idle), not the XLU ---------
    ones_hw = jnp.ones((HW, 1), jnp.float32)
    csum = jnp.dot(x, ones_hw, preferred_element_type=jnp.float32)          # (C, 1)
    csumsq = jnp.dot(x * x, ones_hw, preferred_element_type=jnp.float32)    # (C, 1)
    stacked = jnp.concatenate([csum, csumsq], axis=1)                       # (C, 2)
    count = jnp.float32(cpg * HW)
    gstats = jnp.dot(membert_ref[...], stacked,
                     preferred_element_type=jnp.float32) / count            # (G, 2)
    gmean = gstats[:, 0:1]
    gvar = gstats[:, 1:2] - gmean * gmean                                   # biased variance
    ginv = lax.rsqrt(gvar + eps)                                            # (G, 1)
    per_c = jnp.dot(member_ref[...],
                    jnp.concatenate([gmean, ginv], axis=1),
                    preferred_element_type=jnp.float32)                     # (C, 2)
    scale_c = per_c[:, 1:2] * gamma_ref[...]
    shift_c = beta_ref[...] - per_c[:, 0:1] * scale_c

    gn = x * scale_c + shift_c
    # Cast to bf16 ONCE before the 9 rolls: halves XLU bytes, drops 8 VPU casts.
    act = (gn * jax.nn.sigmoid(gn)).astype(w_ref.dtype)              # SiLU, (C, HW) bf16

    # --- 3x3 conv, padding=1: 9 lane-rolled taps with boundary masking ---------
    # Lane index j encodes (h, w) = (j // W, j % W); tap (dy, dx) reads lane j + dy*W + dx,
    # a pure lane rotation (XLU) instead of an unaligned slice + reshape relayout.
    pos = lax.broadcasted_iota(jnp.int32, (1, HW), 1)
    h_idx = pos // W
    w_idx = pos % W
    acc = jnp.zeros((Cout, HW), jnp.float32)
    for t in range(9):
        dy, dx = t // 3 - 1, t % 3 - 1
        off = dy * W + dx
        shift = (-roll_sign * off) % HW
        src = act if shift == 0 else pltpu.roll(act, shift=shift, axis=1)
        tap = jnp.dot(w_ref[t], src, preferred_element_type=jnp.float32)    # (Cout, HW)
        valid = ((h_idx + dy >= 0) & (h_idx + dy < H)
                 & (w_idx + dx >= 0) & (w_idx + dx < W))             # zero padding
        acc = acc + jnp.where(valid, tap, 0.0)
    out_ref[0] = (acc + b_ref[...]).astype(out_ref.dtype)


def final_layer(x_cf, gamma, beta, conv_w, conv_b, *, H, W, num_groups=32, eps=1e-5):
    # x_cf: (B, C, HW) f32 channels-first; conv_w: (3, 3, C, Cout) HWIO; conv_b: (Cout,)
    B, C, HW = x_cf.shape
    G = num_groups
    cpg = C // G
    Cout = conv_w.shape[-1]
    member = (jnp.arange(C)[:, None] // cpg == jnp.arange(G)[None, :]).astype(jnp.float32)
    w9 = jnp.transpose(conv_w.reshape(9, C, Cout), (0, 2, 1)).astype(jnp.bfloat16)
    kernel = functools.partial(_final_layer_kernel, H=H, W=W, eps=eps, cpg=cpg,
                               roll_sign=_roll_sign())
    return pl.pallas_call(
        kernel,
        out_shape=jax.ShapeDtypeStruct((B, Cout, HW), jnp.float32),
        grid_spec=pltpu.PrefetchScalarGridSpec(
            num_scalar_prefetch=0,
            grid=(B,),
            in_specs=[
                pl.BlockSpec((1, C, HW), lambda b: (b, 0, 0)),
                pl.BlockSpec((C, G), lambda b: (0, 0)),
                pl.BlockSpec((G, C), lambda b: (0, 0)),
                pl.BlockSpec((C, 1), lambda b: (0, 0)),
                pl.BlockSpec((C, 1), lambda b: (0, 0)),
                pl.BlockSpec((9, Cout, C), lambda b: (0, 0, 0)),
                pl.BlockSpec((Cout, 1), lambda b: (0, 0)),
            ],
            out_specs=pl.BlockSpec((1, Cout, HW), lambda b: (b, 0, 0)),
        ),
        compiler_params=pltpu.CompilerParams(dimension_semantics=("parallel",)),
    )(x_cf, member, member.T, gamma.reshape(C, 1), beta.reshape(C, 1),
      w9, conv_b.reshape(Cout, 1))


# --------------------------------- UNet stub ----------------------------------
def unet_stub(latent_nchw, context, time_embed, wp, wt):
    # TODO(synk): the UNet definition was not provided in the reference module; this is a
    # shape-preserving stub (1x1 channel projection + broadcast time embedding), not the real UNet.
    # It emits (B, C, HW) channels-first directly so the fused FinalLayer needs no relayout.
    del context  # unused by the stub
    B, Cin, H, W = latent_nchw.shape
    x = latent_nchw.reshape(B, Cin, H * W)                              # (B, 4, HW)
    feat = jnp.einsum('co,bch->boh', wp, x) + (time_embed @ wt)[:, :, None]
    return feat, H, W                                                   # (B, 320, HW)


# ------------------------------ Full forward ----------------------------------
@jax.jit
def diffuser_forward(latent, context, timestep, params):
    temb = time_embedding(timestep,
                          params["te_w1_q"], params["te_s1"], params["te_b1"],
                          params["te_w2_q"], params["te_s2"], params["te_b2"])     # (B, 1280)
    feat, H, W = unet_stub(latent, context, temb,
                           params["unet_wp"], params["unet_wt"])                   # (B, C, HW)
    out = final_layer(feat, params["gn_gamma"], params["gn_beta"],
                      params["conv_w"], params["conv_b"], H=H, W=W)                # (B, 4, HW)
    B = latent.shape[0]
    return out.reshape(B, -1, H, W)                                                # NCHW


# ------------------------------ Reference (JAX) --------------------------------
def _dequant(q, s):
    return q.astype(jnp.float32) * s


def reference_forward(latent, context, timestep, params):
    w1 = _dequant(params["te_w1_q"], params["te_s1"])
    w2 = _dequant(params["te_w2_q"], params["te_s2"])
    h = timestep @ w1 + params["te_b1"]
    h = h * jax.nn.sigmoid(h)
    temb = h @ w2 + params["te_b2"]
    feat, H, W = unet_stub(latent, context, temb, params["unet_wp"], params["unet_wt"])
    B, C, HW = feat.shape
    G = 32
    xg = feat.reshape(B, G, C // G, HW)
    mean = xg.mean(axis=(2, 3), keepdims=True)
    var = ((xg - mean) ** 2).mean(axis=(2, 3), keepdims=True)
    xn = ((xg - mean) / jnp.sqrt(var + 1e-5)).reshape(B, C, HW)
    xn = xn * params["gn_gamma"][None, :, None] + params["gn_beta"][None, :, None]
    act = (xn * jax.nn.sigmoid(xn)).reshape(B, C, H, W)
    out = lax.conv_general_dilated(
        act, params["conv_w"].astype(jnp.float32),
        window_strides=(1, 1), padding="SAME",
        dimension_numbers=("NCHW", "HWIO", "NCHW"))
    return out + params["conv_b"][None, :, None, None]


# ------------------------------ Params & main ----------------------------------
def _quantize_int8(w):
    # Per-output-channel (column) symmetric int8 quantization.
    amax = jnp.max(jnp.abs(w), axis=0, keepdims=True)
    scale = jnp.maximum(amax, 1e-8) / 127.0
    q = jnp.clip(jnp.round(w / scale), -127, 127).astype(jnp.int8)
    return q, scale.astype(jnp.float32)


def init_params(key):
    d = 320
    ks = jax.random.split(key, 6)
    w1 = jax.random.normal(ks[0], (d, 4 * d), jnp.float32) * 0.02
    w2 = jax.random.normal(ks[1], (4 * d, 4 * d), jnp.float32) * 0.02
    w1q, s1 = _quantize_int8(w1)
    w2q, s2 = _quantize_int8(w2)
    return {
        # TimeEmbedding weights live in int8 + per-column scale (dequant in-kernel to bf16).
        "te_w1_q": w1q, "te_s1": s1, "te_b1": jnp.zeros((1, 4 * d), jnp.float32),
        "te_w2_q": w2q, "te_s2": s2, "te_b2": jnp.zeros((1, 4 * d), jnp.float32),
        "unet_wp": jax.random.normal(ks[2], (4, d), jnp.float32) * 0.5,
        "unet_wt": jax.random.normal(ks[3], (4 * d, d), jnp.float32) * 0.02,
        "gn_gamma": jnp.ones((d,), jnp.float32),
        "gn_beta": jnp.zeros((d,), jnp.float32),
        "conv_w": (jax.random.normal(ks[4], (3, 3, d, 4), jnp.float32) * 0.02).astype(jnp.bfloat16),
        "conv_b": jax.random.normal(ks[5], (4,), jnp.float32) * 0.02,
    }


if __name__ == "__main__":
    key = jax.random.PRNGKey(0)
    kp, kl, kc, kt = jax.random.split(key, 4)
    params = init_params(kp)

    latent = jax.random.normal(kl, (2, 4, 16, 16), jnp.float32)   # NCHW, like PyTorch input
    context = jax.random.normal(kc, (2, 8, 32), jnp.float32)      # unused by the UNet stub
    timestep = jax.random.normal(kt, (2, 320), jnp.float32)

    _ = _roll_sign()  # resolve the pltpu.roll convention once, before tracing the forward

    out = diffuser_forward(latent, context, timestep, params)
    out = jax.block_until_ready(out)

    ref = reference_forward(latent, context, timestep, params)
    assert out.shape == (2, 4, 16, 16), out.shape
    # NOTE: kernel uses bf16 MXU operands (timestep, hidden h, GN+SiLU activation) while the
    # reference is f32; expected ~1e-2 relative drift, within the stated tolerance.
    np.testing.assert_allclose(np.asarray(out), np.asarray(ref), atol=2e-2, rtol=2e-2)
    print("KERNEL_OK")
</pallas_src>

<mosaic_0001>
module attributes {stable_mosaic.version = 11 : i64} {
  func.func @probe_kernel(%arg0: memref<8x128xf32, #tpu.memory_space<vmem>>, %arg1: memref<8x128xf32, #tpu.memory_space<vmem>>) attributes {dimension_semantics = [], scalar_prefetch = 0 : i64, scratch_operands = 0 : i64, tpu.core_type = #tpu.core_type<tc>} {
    %c0 = arith.constant 0 : index
    %c0_0 = arith.constant 0 : index
    %0 = vector.load %arg0[%c0, %c0_0] : memref<8x128xf32, #tpu.memory_space<vmem>>, vector<8x128xf32>
    %c1_i32 = arith.constant 1 : i32
    %1 = tpu.dynamic_rotate %0 by %c1_i32 dim 1 : vector<8x128xf32>, i32 -> vector<8x128xf32>
    %c0_1 = arith.constant 0 : index
    %c0_2 = arith.constant 0 : index
    %2 = vector.load %arg1[%c0_1, %c0_2] : memref<8x128xf32, #tpu.memory_space<vmem>>, vector<8x128xf32>
    tpu.vector_store %arg1[%c0_1, %c0_2], %1 {strides = array<i32>} : memref<8x128xf32, #tpu.memory_space<vmem>>, vector<8x128xf32>,
    return
  }
}

</mosaic_0001>

<bundles_post_ra>
// kernel: tpu_custom_call.1
= control target key start
LH: loop header
LB: loop body
LE: loop exit
PB: predicated region body
PF: predicated region fallthrough
CT: control target
= control target key end

     0   :  { %6 = vsyncpa [#allocation3], 0  ;;  %s128_s0 = inlined_call_operand.hbm [shape: f32[8,128], index: 0, kind: input, shape index: {}]   ;;  %s129_s1 = inlined_call_operand.hbm [shape: f32[8,128], index: 1, kind: output, shape index: {}]  }
   0x1   :  { %7 = vsyncpa [#allocation4], 0  ;;  %s91_s6 = smov [#allocation2]   ;;  %s43_s10 = scalar_lea.hbm %s128_s0, 128 }
   0x2   :  { %s14_s7 = sshll.u32 %s91_s6, 4  ;;  %p44_p0 = scmp.ne.s32.totalorder %s128_s0, %s43_s10  ;;  %s15_s7 = int_to_ptr.vmem [resolvable:$true] %s14_s7 }
   0x3   :  { %p47_p1 = scmp.lt.u32.totalorder %s43_s10, %s128_s0 }
   0x5   :  { %p49_p2 = pnand %p47_p1, %p44_p0 }
   0x7   :  { %52 = shalt.err (!%p49_p2)
}
   0x8   :  { %s53_s15 = scalar_lea.vmem %s15_s7, 128  ;;  %p58_p4 = scmp.lt.s32.totalorder %s15_s7, %s15_s7 }
   0x9   :  { %p54_p3 = scmp.ne.s32.totalorder %s15_s7, %s53_s15  ;;  %p59_p5 = scmp.lt.s32.totalorder %s53_s15, %s53_s15 }
   0xb   :  { %p60_p6 = por %p59_p5, %p58_p4 }
   0xd   :  { %p61_p7 = pnand %p60_p6, %p54_p3 }
   0xf   :  { %64 = shalt.err (!%p61_p7)
}
  0x10   :  { %17 = dma.hbm_to_vmem [thread:$0]  %s128_s0, 128, %s15_s7, [#allocation3]  }
  0x11   :  { %87 = dma.done.wait [#allocation3], 128  }
  0x12   :  { %88 = vsyncadd [#allocation3], 4294967168  ;;  %v21_v0 = vld [vmem:[#allocation2] sm:$0xff]  ;;  %s92_s18 = smov 1   ;;  %s93_s19 = smov [#allocation5]  }
  0x13   :  { %22 = vrot.lane.b32.xlu0 %v21_v0, %s92_s18  ;;  %s31_s20 = sshll.u32 %s93_s19, 4  ;;  %s32_s20 = int_to_ptr.vmem [resolvable:$true] %s31_s20 }
  0x14   :  { %s65_s21 = scalar_lea.vmem %s32_s20, 128  ;;  %p70_p9 = scmp.lt.s32.totalorder %s32_s20, %s32_s20 }
  0x15   :  { %p66_p8 = scmp.ne.s32.totalorder %s32_s20, %s65_s21  ;;  %p71_p10 = scmp.lt.s32.totalorder %s65_s21, %s65_s21 }
  0x17   :  { %p72_p11 = por %p71_p10, %p70_p9 }
  0x19   :  { %p73_p12 = pnand %p72_p11, %p66_p8 }
  0x85   :  { %v23_v1 = vpop.permute.xlu0 %22 }
  0x86   :  { %24 = vst [vmem:[#allocation5] sm:$0xff] %v23_v1 }
  0x87   :  { %76 = shalt.err (!%p73_p12)
}
  0x88   :  { %s77_s0 = scalar_lea.hbm %s129_s1, 128 }
  0x89   :  { %p78_p13 = scmp.ne.s32.totalorder %s129_s1, %s77_s0  ;;  %p81_p0 = scmp.lt.u32.totalorder %s77_s0, %s129_s1 }
  0x8b   :  { %p83_p1 = pnand %p81_p0, %p78_p13 }
  0x8d   :  { %86 = shalt.err (!%p83_p1)
}
  0x8e   :  { %34 = dma.vmem_to_hbm [thread:$0]  %s32_s20, 128, %s129_s1, [#allocation4]  }
  0x8f   :  { %89 = dma.done.wait [#allocation4], 128  }
  0x90   :  { %90 = vsyncadd [#allocation4], 4294967168 }
  0x91   :  { %38 = vsyncpa [#allocation3], 1 }
  0x92   :  { %39 = vsyncpa [#allocation4], 1 }

</bundles_post_ra>
